<compile_context>
chip_gen: v7x
topology: tpu7x:2x2x1
jax: 0.10.0
libtpu: 0.0.40
codegen_flags: <defaults>
</compile_context>

<pallas_src>
import numpy as np
import jax
import jax.numpy as jnp
from jax import lax
from jax.experimental import pallas as pl
from jax.experimental.pallas import tpu as pltpu


def _round_up(x, m):
    return ((x + m - 1) // m) * m


def _choose_tb(batch, tb_max):
    """Batch (lane) tile: large (amortizes ~0.35us/step overhead), multiple of 128
    (unmasked lane-dense stores), and yielding >=2 grid steps when the batch allows
    so "parallel" semantics can shard across both v7x TensorCores."""
    bp = _round_up(max(int(batch), 1), 128)
    if bp <= 128:
        return 128
    half = max(128, (bp // 2) // 128 * 128)
    return int(min(tb_max, half))


def make_features_linear(field_dims, table, bias, *, tb_max=512):
    """Build a FeaturesLinear forward fn.

    field_dims: per-field vocab sizes (offsets = exclusive cumsum, as in the module).
    table: (sum(field_dims), D) f32 embedding weights.  bias: (D,) f32.
    Returns apply(x_idx) -> (B, D), matching
        torch.sum(Embedding(x + offsets), dim=1) + bias.
    """
    field_dims = tuple(int(d) for d in field_dims)
    F = len(field_dims)
    offsets = np.array((0, *np.cumsum(field_dims)[:-1]), dtype=np.int64)

    table_np = np.asarray(table, dtype=np.float32)
    bias_np = np.asarray(bias, dtype=np.float32).reshape(-1)
    V, D = table_np.shape
    assert V == sum(field_dims), "table rows must equal sum(field_dims)"
    assert bias_np.shape[0] == D

    Dp = _round_up(D, 8)                                  # sublane-pad output dim
    pads = tuple(_round_up(d, 8) for d in field_dims)     # per-field padded sizes
    col_starts = tuple(int(c) for c in np.concatenate([[0], np.cumsum(pads)[:-1]]))
    Vtot = int(sum(pads)) + 8                             # +8-row block carries the bias

    # ---- hoisted, one-time parameter prep (NOT on the per-call path) ----
    tab_aug = np.zeros((Dp, Vtot), dtype=np.float32)
    for f in range(F):
        o, n, c = int(offsets[f]), field_dims[f], col_starts[f]
        tab_aug[:D, c:c + n] = table_np[o:o + n, :].T     # field f's columns (repacked)
    tab_aug[:D, sum(pads)] = bias_np                      # bias column (hit by ones row)
    table_aug_t = jnp.asarray(tab_aug)                    # (Dp, Vtot) f32, device-resident

    def kernel(idx_ref, tab_ref, out_ref):
        # idx_ref: (F, TB) int32   raw per-field indices, batch on the 128-lane axis
        # tab_ref: (Dp, Vtot) f32  repacked transposed table (+ bias column), resident
        # out_ref: (Dp, TB) f32    transposed output tile (lane-dense stores)
        TB = idx_ref.shape[1]
        blocks = []
        for f in range(F):                                # F is small and static
            vpad = pads[f]
            iota_f = lax.broadcasted_iota(jnp.int32, (vpad, TB), 0)
            # Compare only this field's (padded) sub-range against its LOCAL index.
            blocks.append((iota_f == idx_ref[f:f + 1, :]).astype(jnp.float32))
        # Ones row that multiplies the bias column of tab_ref (bias folded into matmul).
        blocks.append((lax.broadcasted_iota(jnp.int32, (8, TB), 0) == 0)
                      .astype(jnp.float32))
        mh = jnp.concatenate(blocks, axis=0)              # (Vtot, TB), exact 0/1
        out_ref[...] = jnp.dot(tab_ref[...], mh, preferred_element_type=jnp.float32)

    def _forward(x_idx, tab_aug_arr):
        B = x_idx.shape[0]
        assert x_idx.shape[1] == F
        tb = _choose_tb(B, tb_max)
        Bp = _round_up(B, tb)
        # Pad batch lanes with -1 so they match nothing (only pick up the bias) and
        # are sliced off below.
        x_t = jnp.full((F, Bp), -1, dtype=jnp.int32).at[:, :B].set(
            x_idx.astype(jnp.int32).T)

        # VMEM budget: resident table (x2 buffers), mh + iota intermediates, idx/out tiles.
        est = 4 * (2 * Dp * Vtot + 4 * Vtot * tb + 2 * F * tb + 2 * Dp * tb)
        vmem_limit = int(max(32 * 2 ** 20, min(100 * 2 ** 20, 2 * est)))

        out_t = pl.pallas_call(
            kernel,
            out_shape=jax.ShapeDtypeStruct((Dp, Bp), jnp.float32),
            grid=(Bp // tb,),
            in_specs=[
                pl.BlockSpec((F, tb), lambda i: (0, i)),      # idx tile, batch on lanes
                pl.BlockSpec((Dp, Vtot), lambda i: (0, 0)),   # table, resident (no re-DMA)
            ],
            out_specs=pl.BlockSpec((Dp, tb), lambda i: (0, i)),
            compiler_params=pltpu.CompilerParams(
                dimension_semantics=("parallel",),            # batch sharded across TCs
                vmem_limit_bytes=vmem_limit,
            ),
            cost_estimate=pl.CostEstimate(
                flops=2 * Bp * Vtot * Dp,
                transcendentals=0,
                bytes_accessed=4 * (Dp * Vtot + F * Bp + Dp * Bp),
            ),
        )(x_t, tab_aug_arr)
        return out_t[:D, :B].T                                # (B, D)

    fwd = jax.jit(_forward)

    def apply(x_idx):
        return fwd(x_idx, table_aug_t)

    return apply


if __name__ == "__main__":
    # Small, deterministic setup consistent with the module.
    field_dims = (3, 5, 7, 9)          # F = 4 fields, V = sum = 24
    output_dim = 1
    F = len(field_dims)
    V = int(sum(field_dims))

    key = jax.random.PRNGKey(0)
    k_tab, *k_idx = jax.random.split(key, 1 + F)

    table = jax.random.normal(k_tab, (V, output_dim), dtype=jnp.float32) * 0.1
    bias = jnp.full((output_dim,), 0.25, dtype=jnp.float32)   # nonzero to exercise the fold

    offsets = jnp.asarray(np.array((0, *np.cumsum(field_dims)[:-1]), dtype=np.int32))
    features_linear = make_features_linear(field_dims, table, bias)

    def reference(x):
        return jnp.take(table, x + offsets[None, :], axis=0).sum(axis=1) + bias[None, :]

    # Case 1: tiny batch (single grid step).
    B = 8
    cols = [jax.random.randint(k_idx[f], (B, 1), 0, field_dims[f], dtype=jnp.int32)
            for f in range(F)]
    x_small = jnp.concatenate(cols, axis=1)                   # (8, 4)
    out_small = jax.block_until_ready(features_linear(x_small))
    np.testing.assert_allclose(np.asarray(out_small), np.asarray(reference(x_small)),
                               rtol=1e-5, atol=1e-5)

    # Case 2: batch that needs padding and a multi-step grid (exercises -1 lane padding).
    B2 = 300
    cols2 = [jax.random.randint(jax.random.fold_in(k_idx[f], 7), (B2, 1), 0,
                                field_dims[f], dtype=jnp.int32) for f in range(F)]
    x_big = jnp.concatenate(cols2, axis=1)                    # (300, 4)
    out_big = jax.block_until_ready(features_linear(x_big))
    np.testing.assert_allclose(np.asarray(out_big), np.asarray(reference(x_big)),
                               rtol=1e-5, atol=1e-5)

    print("KERNEL_OK")
</pallas_src>

<mosaic_0001>
module attributes {stable_mosaic.version = 11 : i64} {
  func.func @kernel(%arg0: i32, %arg1: memref<4x128xi32, #tpu.memory_space<vmem>>, %arg2: memref<8x48xf32, #tpu.memory_space<vmem>>, %arg3: memref<8x128xf32, #tpu.memory_space<vmem>>) attributes {dimension_semantics = [#tpu.dimension_semantics<parallel>], iteration_bounds = array<i64: 1>, scalar_prefetch = 0 : i64, scratch_operands = 0 : i64, tpu.core_type = #tpu.core_type<tc>, window_params = [{transform_indices = @transform_0, window_bounds = array<i64: 4, 128>}, {pipeline_mode = #tpu.pipeline_mode<synchronous>, transform_indices = @transform_1, window_bounds = array<i64: 8, 48>}, {transform_indices = @transform_2, window_bounds = array<i64: 8, 128>}]} {
    %0 = tpu.iota {dimensions = array<i32: 0>} : vector<8x128xi32>
    %c0 = arith.constant 0 : index
    %c0_0 = arith.constant 0 : index
    %1 = vector.load %arg1[%c0, %c0_0] : memref<4x128xi32, #tpu.memory_space<vmem>>, vector<1x128xi32>
    %2 = vector.broadcast %1 : vector<1x128xi32> to vector<8x128xi32>
    %3 = arith.cmpi eq, %0, %2 : vector<8x128xi32>
    %4 = arith.extui %3 : vector<8x128xi1> to vector<8x128xi32>
    %5 = arith.sitofp %4 : vector<8x128xi32> to vector<8x128xf32>
    %6 = tpu.iota {dimensions = array<i32: 0>} : vector<8x128xi32>
    %c1 = arith.constant 1 : index
    %c0_1 = arith.constant 0 : index
    %7 = vector.load %arg1[%c1, %c0_1] : memref<4x128xi32, #tpu.memory_space<vmem>>, vector<1x128xi32>
    %8 = vector.broadcast %7 : vector<1x128xi32> to vector<8x128xi32>
    %9 = arith.cmpi eq, %6, %8 : vector<8x128xi32>
    %10 = arith.extui %9 : vector<8x128xi1> to vector<8x128xi32>
    %11 = arith.sitofp %10 : vector<8x128xi32> to vector<8x128xf32>
    %12 = tpu.iota {dimensions = array<i32: 0>} : vector<8x128xi32>
    %c2 = arith.constant 2 : index
    %c0_2 = arith.constant 0 : index
    %13 = vector.load %arg1[%c2, %c0_2] : memref<4x128xi32, #tpu.memory_space<vmem>>, vector<1x128xi32>
    %14 = vector.broadcast %13 : vector<1x128xi32> to vector<8x128xi32>
    %15 = arith.cmpi eq, %12, %14 : vector<8x128xi32>
    %16 = arith.extui %15 : vector<8x128xi1> to vector<8x128xi32>
    %17 = arith.sitofp %16 : vector<8x128xi32> to vector<8x128xf32>
    %18 = tpu.iota {dimensions = array<i32: 0>} : vector<16x128xi32>
    %c3 = arith.constant 3 : index
    %c0_3 = arith.constant 0 : index
    %19 = vector.load %arg1[%c3, %c0_3] : memref<4x128xi32, #tpu.memory_space<vmem>>, vector<1x128xi32>
    %20 = vector.broadcast %19 : vector<1x128xi32> to vector<16x128xi32>
    %21 = arith.cmpi eq, %18, %20 : vector<16x128xi32>
    %22 = arith.extui %21 : vector<16x128xi1> to vector<16x128xi32>
    %23 = arith.sitofp %22 : vector<16x128xi32> to vector<16x128xf32>
    %24 = tpu.iota {dimensions = array<i32: 0>} : vector<8x128xi32>
    %c0_i32 = arith.constant 0 : i32
    %25 = vector.broadcast %c0_i32 : i32 to vector<8x128xi32>
    %26 = arith.cmpi eq, %24, %25 : vector<8x128xi32>
    %27 = arith.extui %26 : vector<8x128xi1> to vector<8x128xi32>
    %28 = arith.sitofp %27 : vector<8x128xi32> to vector<8x128xf32>
    %29 = tpu.concatenate %5, %11, %17, %23, %28 in 0 : vector<8x128xf32>, vector<8x128xf32>, vector<8x128xf32>, vector<16x128xf32>, vector<8x128xf32> -> vector<48x128xf32>
    %c0_4 = arith.constant 0 : index
    %c0_5 = arith.constant 0 : index
    %30 = vector.load %arg2[%c0_4, %c0_5] : memref<8x48xf32, #tpu.memory_space<vmem>>, vector<8x48xf32>
    %cst = arith.constant dense<0.000000e+00> : vector<8x128xf32>
    %31 = tpu.matmul %30, %29, %cst {dimension_numbers = #tpu.dot_dimension_numbers<[1], [0], [0], [1], [0, 0, 1, 1], [], []>} : vector<8x48xf32>, vector<48x128xf32>, vector<8x128xf32> -> vector<8x128xf32>
    %c0_6 = arith.constant 0 : index
    %c0_7 = arith.constant 0 : index
    %32 = vector.load %arg3[%c0_6, %c0_7] : memref<8x128xf32, #tpu.memory_space<vmem>>, vector<8x128xf32>
    tpu.vector_store %arg3[%c0_6, %c0_7], %31 {strides = array<i32>} : memref<8x128xf32, #tpu.memory_space<vmem>>, vector<8x128xf32>,
    return
  }
  func.func @transform_0(%arg0: i32) -> (i32, i32) {
    %c0_i32 = arith.constant 0 : i32
    %c0_i32_0 = arith.constant 0 : i32
    return %c0_i32, %arg0 : i32, i32
  }
  func.func @transform_1(%arg0: i32) -> (i32, i32) {
    %c0_i32 = arith.constant 0 : i32
    %c0_i32_0 = arith.constant 0 : i32
    %c0_i32_1 = arith.constant 0 : i32
    return %c0_i32, %c0_i32_0 : i32, i32
  }
  func.func @transform_2(%arg0: i32) -> (i32, i32) {
    %c0_i32 = arith.constant 0 : i32
    %c0_i32_0 = arith.constant 0 : i32
    return %c0_i32, %arg0 : i32, i32
  }
}

</mosaic_0001>

<bundles_post_ra>
// kernel: _forward.1
= control target key start
LH: loop header
LB: loop body
LE: loop exit
PB: predicated region body
PF: predicated region fallthrough
CT: control target
= control target key end

     0   :  { %v11_v0 = vlaneseq  ;;  %v184_v1 = vmov 0.0|0.0   ;;  %vm185_vm0 = vmmov 0   ;;  %v186_v7 = vmov 0.0   ;;  %s221_s0 = inlined_call_operand.vmem [shape: s32[4,128], index: 0, kind: input, shape index: {}]   ;;  %s222_s1 = inlined_call_operand.vmem [shape: f32[8,48], index: 1, kind: input, shape index: {}]   ;;  %s223_s2 = inlined_call_operand.vmem [shape: f32[8,128], index: 2, kind: output, shape index: {}]  }
   0x1   :  { %171 = vmatprep.subr.bf16.mxu0 %v184_v1  ;;  %v132_v2 = vld [vmem:[%s221_s0] ss:$0 sm:$0xff]  ;;  %v134_v3 = vld [vmem:[%s221_s0 + $0x1] ss:$0 sm:$0xff]  ;;  %v136_v4 = vld [vmem:[%s221_s0 + $0x2] ss:$0 sm:$0xff]  ;;  %168 = vmatprep.mubr.msk.f32.mxu0 %vm185_vm0, %v186_v7 }
   0x2   :  { %v12_v5 = vshrl.u32 %v11_v0, 7  ;;  %v138_v6 = vld [vmem:[%s221_s0 + $0x3] ss:$0 sm:$0xff]  ;;  %v187_v9 = vmov 1.0|1.0   ;;  %vm53_vm10 = vcmask 392192  }
   0x3   :  { %v52_v10 = vld [vmem:[%s222_s1] sm:$0xff] }
   0x4   :  { %vm18_vm1 = vcmp.eq.s32.totalorder %v12_v5, %v132_v2  ;;  %vm26_vm2 = vcmp.eq.s32.totalorder %v12_v5, %v134_v3  ;;  %vm34_vm3 = vcmp.eq.s32.totalorder %v12_v5, %v136_v4  ;;  %vm43_vm4 = vcmp.eq.s32.totalorder %v12_v5, %v138_v6 }
   0x5   :  { %vm172_vm5 = vmpackc.low %vm26_vm2, %vm18_vm1  ;;  %v37_v8 = vadd.s32 8, %v12_v5  ;;  %vm49_vm8 = vcmp.eq.s32.totalorder %v12_v5, 0 }
   0x6   :  { %173 = vmatpush3.bf16.msk.msra.mxu0 %vm172_vm5, %v187_v9  ;;  %vm175_vm6 = vmpackc.low %vm43_vm4, %vm34_vm3 }
   0x7   :  { %174 = vmatprep.subr.bf16.mxu0 %v184_v1  ;;  %vm44_vm7 = vcmp.eq.s32.totalorder %v37_v8, %v138_v6 }
   0x8   :  { %vm178_vm9 = vmpackc.low %vm49_vm8, %vm44_vm7 }
   0xa   :  { %176 = vmatpush3.bf16.msk.msra.mxu0 %vm175_vm6, %v187_v9 }
   0xb   :  { %177 = vmatprep.subr.bf16.mxu0 %v184_v1 }
   0xe   :  { %179 = vmatpush3.bf16.msk.msra.mxu0 %vm178_vm9, %v187_v9 }
  0x11   :  { %169 = vmatmul.mubr.msk.f32.vlgmr.msra.gmra.mrb[0].mxu0 %vm53_vm10, %v52_v10 }
  0xe4   :  { %v123_v11 = vpop.f32.mrb[0].mxu0 }
  0xe5   :  { %127 = vst [vmem:[%s223_s2] sm:$0xff] %v123_v11  ;;  %v170_v12 = vpop.f32.mrb[1].mxu0 }

</bundles_post_ra>
